<compile_context>
chip_gen: v6e
topology: v6e:2x2x1
jax: 0.10.0
libtpu: 0.0.40
codegen_flags: <defaults>
</compile_context>

<pallas_src>
import functools

import jax
import jax.numpy as jnp
from jax.experimental import pallas as pl
from jax.experimental.pallas import tpu as pltpu

_SUBLANE = 8      # f32 sublane count
_LANE = 128       # vreg lane width


def _round_up(x: int, m: int) -> int:
    return ((x + m - 1) // m) * m


# ---------------------------------------------------------------------------
# Kernels
# ---------------------------------------------------------------------------
def _logreg_kernel(x_ref, w_ref, b_ref, o_ref):
    """Whole-D path.  x:(TB,D) w:(D,C) b:(1,C) o:(TB,C)."""
    logits = jnp.dot(x_ref[...], w_ref[...],
                     preferred_element_type=jnp.float32)
    logits = logits + b_ref[...].astype(jnp.float32)
    # numerically stable softmax along the last dim
    m = jnp.max(logits, axis=-1, keepdims=True)
    e = jnp.exp(logits - m)
    denom = jnp.sum(e, axis=-1, keepdims=True)
    o_ref[...] = (e / denom).astype(o_ref.dtype)


def _logreg_kernel_ktiled(x_ref, w_ref, b_ref, o_ref, acc_ref, *, d_total, tk):
    """K-tiled path for large D.  x:(TB,TK) w:(TK,C) b:(1,C) acc:(TB,C) f32."""
    k = pl.program_id(1)

    @pl.when(k == 0)
    def _():
        acc_ref[...] = jnp.zeros_like(acc_ref)

    # Mask the (possibly partial) last K tile so stale VMEM never reaches the
    # accumulator.  A cheap VPU select; the kernel is mem-bound anyway.
    valid = d_total - k * tk
    col = jax.lax.broadcasted_iota(jnp.int32, (1, tk), 1)
    row = jax.lax.broadcasted_iota(jnp.int32, (tk, 1), 0)
    xb = jnp.where(col < valid, x_ref[...], 0).astype(x_ref.dtype)
    wb = jnp.where(row < valid, w_ref[...], 0).astype(w_ref.dtype)
    acc_ref[...] += jnp.dot(xb, wb, preferred_element_type=jnp.float32)

    @pl.when(k == pl.num_programs(1) - 1)
    def _():
        logits = acc_ref[...] + b_ref[...].astype(jnp.float32)
        m = jnp.max(logits, axis=-1, keepdims=True)
        e = jnp.exp(logits - m)
        denom = jnp.sum(e, axis=-1, keepdims=True)
        o_ref[...] = (e / denom).astype(o_ref.dtype)


# ---------------------------------------------------------------------------
# pallas_call builders
# ---------------------------------------------------------------------------
def _make_simple_call(B, D, C, tb, n_b, out_dtype, vmem_limit, cost, buffered):
    if buffered:
        w_spec = pl.BlockSpec((D, C), lambda i: (0, 0),
                              pipeline_mode=pl.Buffered(1))
        b_spec = pl.BlockSpec((1, C), lambda i: (0, 0),
                              pipeline_mode=pl.Buffered(1))
    else:
        w_spec = pl.BlockSpec((D, C), lambda i: (0, 0))
        b_spec = pl.BlockSpec((1, C), lambda i: (0, 0))
    return pl.pallas_call(
        _logreg_kernel,
        out_shape=jax.ShapeDtypeStruct((B, C), out_dtype),
        grid_spec=pltpu.PrefetchScalarGridSpec(
            num_scalar_prefetch=0,
            grid=(n_b,),
            in_specs=[
                pl.BlockSpec((tb, D), lambda i: (i, 0)),   # x tile (pipelined)
                w_spec,                                    # weight (resident)
                b_spec,                                    # bias   (resident)
            ],
            out_specs=pl.BlockSpec((tb, C), lambda i: (i, 0)),
        ),
        compiler_params=pltpu.CompilerParams(
            dimension_semantics=("parallel",),
            vmem_limit_bytes=vmem_limit),
        cost_estimate=cost,
    )


def _make_ktiled_call(B, D, C, tb, tk, n_b, n_k, out_dtype, vmem_limit, cost,
                      buffered):
    kernel = functools.partial(_logreg_kernel_ktiled, d_total=D, tk=tk)
    if buffered:
        b_spec = pl.BlockSpec((1, C), lambda i, k: (0, 0),
                              pipeline_mode=pl.Buffered(1))
    else:
        b_spec = pl.BlockSpec((1, C), lambda i, k: (0, 0))
    return pl.pallas_call(
        kernel,
        out_shape=jax.ShapeDtypeStruct((B, C), out_dtype),
        grid_spec=pltpu.PrefetchScalarGridSpec(
            num_scalar_prefetch=0,
            grid=(n_b, n_k),
            in_specs=[
                pl.BlockSpec((tb, tk), lambda i, k: (i, k)),   # x tile
                pl.BlockSpec((tk, C), lambda i, k: (k, 0)),    # weight slab
                b_spec,                                        # bias (resident)
            ],
            out_specs=pl.BlockSpec((tb, C), lambda i, k: (i, 0)),
            scratch_shapes=[pltpu.VMEM((tb, C), jnp.float32)],
        ),
        compiler_params=pltpu.CompilerParams(
            dimension_semantics=("parallel", "arbitrary"),
            vmem_limit_bytes=vmem_limit),
        cost_estimate=cost,
    )


# ---------------------------------------------------------------------------
# Forward wrapper (mirrors LogisticRegression.forward)
# ---------------------------------------------------------------------------
def logistic_regression_forward(x, weight, bias=None, *, block_b: int = 512,
                                vmem_budget_bytes: int = 32 << 20):
    """softmax(x.squeeze() @ weight + bias, axis=-1).

    x:      [..., input_dim] possibly with singleton dims (torch .squeeze()).
    weight: [input_dim, num_classes] (transposed vs torch Linear.weight [C,D]).
    bias:   [num_classes] or None (bias=False).
    """
    D, C = weight.shape

    # torch .squeeze(): drop all size-1 dims; recover a 2-D [B, D] layout.
    # TODO(synk): inputs like [1,1,1] or input_dim==1 are ambiguous under
    # torch .squeeze() semantics too; we assume the last dim is input_dim.
    x2d = jnp.squeeze(x)
    if x2d.ndim == 1:
        x2d = x2d[None, :]
    assert x2d.ndim == 2 and x2d.shape[-1] == D, (x2d.shape, D)
    B = x2d.shape[0]

    if bias is None:
        bias = jnp.zeros((C,), weight.dtype)
    b2 = jnp.reshape(bias, (1, C))

    out_dtype = jnp.promote_types(x2d.dtype, weight.dtype)
    if (not jnp.issubdtype(out_dtype, jnp.floating)
            or jnp.dtype(out_dtype).itemsize > 4):
        out_dtype = jnp.float32

    x_bytes = jnp.dtype(x2d.dtype).itemsize
    w_bytes = jnp.dtype(weight.dtype).itemsize
    o_bytes = jnp.dtype(out_dtype).itemsize

    # --- decide K-tiling: resident weight must fit comfortably in VMEM ------
    k_tiled = D * C * w_bytes > vmem_budget_bytes // 4
    tk = D
    if k_tiled:
        tk = (vmem_budget_bytes // 8) // max(1, C * w_bytes)
        tk = max(_LANE, (tk // _LANE) * _LANE)     # lane-width multiple
        tk = min(tk, _round_up(D, _LANE))
        k_tiled = tk < D
    d_eff = tk if k_tiled else D
    n_k = pl.cdiv(D, tk) if k_tiled else 1

    # --- batch tile: large (amortize grid-step overhead), within VMEM, and
    # --- small enough that >=2 grid tiles exist for v7x's two TensorCores ---
    per_row = 2 * d_eff * x_bytes + 2 * C * o_bytes + 4 * C
    tb_budget = max(_SUBLANE, (vmem_budget_bytes // 2) // max(per_row, 1))
    tb = min(block_b, tb_budget, _round_up(pl.cdiv(B, 2), _SUBLANE))
    tb = max(_SUBLANE, (tb // _SUBLANE) * _SUBLANE)
    n_b = pl.cdiv(B, tb)

    needed = (2 * tb * d_eff * x_bytes       # x tiles (double-buffered)
              + 2 * d_eff * C * w_bytes      # weight slab(s), worst case
              + 2 * C * w_bytes              # bias
              + 2 * tb * C * o_bytes         # out tiles (double-buffered)
              + tb * C * 4)                  # f32 accumulator (K-tiled)
    vmem_limit = int(min(max(2 * needed, 32 << 20), 56 << 20))

    cost = pl.CostEstimate(
        flops=2 * B * D * C,
        transcendentals=B * C,
        bytes_accessed=(B * D * x_bytes + D * C * w_bytes + C * w_bytes
                        + B * C * o_bytes),
    )

    def _run(buffered):
        if k_tiled:
            fn = _make_ktiled_call(B, D, C, tb, tk, n_b, n_k, out_dtype,
                                   vmem_limit, cost, buffered)
        else:
            fn = _make_simple_call(B, D, C, tb, n_b, out_dtype,
                                   vmem_limit, cost, buffered)
        return jax.block_until_ready(fn(x2d, weight, b2))

    try:
        return _run(True)
    except Exception:
        # TODO(synk): pl.Buffered(1) single-buffering of the constant-index
        # weight/bias is a pure VMEM optimization; fall back to default
        # double-buffering if this jax version rejects buffer_count=1.
        return _run(False)


if __name__ == "__main__":
    # small shapes consistent with the module: batch=2, input_dim=32, classes=8
    batch, input_dim, num_classes = 2, 32, 8

    key = jax.random.PRNGKey(0)
    k_x, k_w, k_b, k_extra = jax.random.split(key, 4)

    # deterministic nn.Linear-style init: U(-1/sqrt(in), 1/sqrt(in))
    bound = 1.0 / (input_dim ** 0.5)
    weight = jax.random.uniform(k_w, (input_dim, num_classes),
                                dtype=jnp.float32, minval=-bound, maxval=bound)
    bias = jax.random.uniform(k_b, (num_classes,),
                              dtype=jnp.float32, minval=-bound, maxval=bound)

    # input with a squeeze-able singleton dim, as the torch forward expects
    x = jax.random.normal(k_x, (batch, 1, input_dim), dtype=jnp.float32)

    y_hat = jax.block_until_ready(logistic_regression_forward(x, weight, bias))
    ref = jax.nn.softmax(jnp.squeeze(x) @ weight + bias, axis=-1)

    assert y_hat.shape == (batch, num_classes)
    assert jnp.allclose(jnp.sum(y_hat, axis=-1), 1.0, atol=1e-5)
    assert jnp.allclose(y_hat, ref, atol=1e-5, rtol=1e-5)

    # also exercise the K-tiled fallback path (non-divisible D, partial batch
    # tile, masked partial K tile) by forcing a tiny VMEM budget.
    D2, B2 = 200, 18
    k_w2, k_b2 = jax.random.split(k_extra)
    w2 = jax.random.uniform(k_w2, (D2, num_classes),
                            dtype=jnp.float32, minval=-0.1, maxval=0.1)
    b2v = jax.random.uniform(k_b2, (num_classes,),
                             dtype=jnp.float32, minval=-0.1, maxval=0.1)
    x2 = jax.random.normal(k_x, (B2, D2), dtype=jnp.float32)
    y2 = jax.block_until_ready(
        logistic_regression_forward(x2, w2, b2v, vmem_budget_bytes=20_000))
    ref2 = jax.nn.softmax(x2 @ w2 + b2v, axis=-1)
    assert y2.shape == (B2, num_classes)
    assert jnp.allclose(y2, ref2, atol=3e-5, rtol=3e-5)

    print("KERNEL_OK")
</pallas_src>

<mosaic_0001>
module attributes {stable_mosaic.version = 11 : i64} {
  func.func @_logreg_kernel(%arg0: i32, %arg1: memref<8x32xf32, #tpu.memory_space<vmem>>, %arg2: memref<32x8xf32, #tpu.memory_space<vmem>>, %arg3: memref<1x8xf32, #tpu.memory_space<vmem>>, %arg4: memref<8x8xf32, #tpu.memory_space<vmem>>) attributes {dimension_semantics = [#tpu.dimension_semantics<parallel>], iteration_bounds = array<i64: 1>, scalar_prefetch = 0 : i64, scratch_operands = 0 : i64, tpu.core_type = #tpu.core_type<tc>, window_params = [{transform_indices = @transform_0, window_bounds = array<i64: 8, 32>}, {pipeline_mode = #tpu.pipeline_mode<synchronous>, transform_indices = @transform_1, window_bounds = array<i64: 32, 8>}, {pipeline_mode = #tpu.pipeline_mode<synchronous>, transform_indices = @transform_2, window_bounds = array<i64: 1, 8>}, {transform_indices = @transform_3, window_bounds = array<i64: 8, 8>}]} {
    %c0 = arith.constant 0 : index
    %c0_0 = arith.constant 0 : index
    %0 = vector.load %arg1[%c0, %c0_0] : memref<8x32xf32, #tpu.memory_space<vmem>>, vector<8x32xf32>
    %c0_1 = arith.constant 0 : index
    %c0_2 = arith.constant 0 : index
    %1 = vector.load %arg2[%c0_1, %c0_2] : memref<32x8xf32, #tpu.memory_space<vmem>>, vector<32x8xf32>
    %cst = arith.constant dense<0.000000e+00> : vector<8x8xf32>
    %2 = tpu.matmul %0, %1, %cst {dimension_numbers = #tpu.dot_dimension_numbers<[1], [0], [0], [1], [0, 0, 1, 1], [], []>} : vector<8x32xf32>, vector<32x8xf32>, vector<8x8xf32> -> vector<8x8xf32>
    %c0_3 = arith.constant 0 : index
    %c0_4 = arith.constant 0 : index
    %3 = vector.load %arg3[%c0_3, %c0_4] : memref<1x8xf32, #tpu.memory_space<vmem>>, vector<1x8xf32>
    %4 = vector.broadcast %3 : vector<1x8xf32> to vector<8x8xf32>
    %5 = arith.addf %2, %4 : vector<8x8xf32>
    %cst_5 = arith.constant dense<0xFF800000> : vector<8xf32>
    %6 = vector.multi_reduction <maximumf>, %5, %cst_5 [1] : vector<8x8xf32> to vector<8xf32>
    %7 = vector.shape_cast %6 : vector<8xf32> to vector<8x1xf32>
    %8 = vector.broadcast %7 : vector<8x1xf32> to vector<8x8xf32>
    %9 = arith.subf %5, %8 : vector<8x8xf32>
    %10 = math.exp %9 : vector<8x8xf32>
    %cst_6 = arith.constant dense<0.000000e+00> : vector<8xf32>
    %11 = vector.multi_reduction <add>, %10, %cst_6 [1] : vector<8x8xf32> to vector<8xf32>
    %12 = vector.shape_cast %11 : vector<8xf32> to vector<8x1xf32>
    %13 = vector.broadcast %12 : vector<8x1xf32> to vector<8x8xf32>
    %14 = arith.divf %10, %13 : vector<8x8xf32>
    %c0_7 = arith.constant 0 : index
    %c0_8 = arith.constant 0 : index
    %15 = vector.load %arg4[%c0_7, %c0_8] : memref<8x8xf32, #tpu.memory_space<vmem>>, vector<8x8xf32>
    tpu.vector_store %arg4[%c0_7, %c0_8], %14 {strides = array<i32>} : memref<8x8xf32, #tpu.memory_space<vmem>>, vector<8x8xf32>,
    return
  }
  func.func @transform_0(%arg0: i32) -> (i32, i32) {
    %c0_i32 = arith.constant 0 : i32
    %c0_i32_0 = arith.constant 0 : i32
    return %arg0, %c0_i32 : i32, i32
  }
  func.func @transform_1(%arg0: i32) -> (i32, i32) {
    %c0_i32 = arith.constant 0 : i32
    %c0_i32_0 = arith.constant 0 : i32
    %c0_i32_1 = arith.constant 0 : i32
    return %c0_i32, %c0_i32_0 : i32, i32
  }
  func.func @transform_2(%arg0: i32) -> (i32, i32) {
    %c0_i32 = arith.constant 0 : i32
    %c0_i32_0 = arith.constant 0 : i32
    %c0_i32_1 = arith.constant 0 : i32
    return %c0_i32, %c0_i32_0 : i32, i32
  }
  func.func @transform_3(%arg0: i32) -> (i32, i32) {
    %c0_i32 = arith.constant 0 : i32
    %c0_i32_0 = arith.constant 0 : i32
    return %arg0, %c0_i32 : i32, i32
  }
}

module attributes {stable_mosaic.version = 11 : i64} {
  func.func @_logreg_kernel(%arg0: i32, %arg1: memref<8x32xf32, #tpu.memory_space<vmem>>, %arg2: memref<32x8xf32, #tpu.memory_space<vmem>>, %arg3: memref<1x8xf32, #tpu.memory_space<vmem>>, %arg4: memref<8x8xf32, #tpu.memory_space<vmem>>) attributes {dimension_semantics = [#tpu.dimension_semantics<parallel>], iteration_bounds = array<i64: 1>, scalar_prefetch = 0 : i64, scratch_operands = 0 : i64, tpu.core_type = #tpu.core_type<tc>, window_params = [{transform_indices = @transform_0, window_bounds = array<i64: 8, 32>}, {pipeline_mode = #tpu.pipeline_mode<synchronous>, transform_indices = @transform_1, window_bounds = array<i64: 32, 8>}, {pipeline_mode = #tpu.pipeline_mode<synchronous>, transform_indices = @transform_2, window_bounds = array<i64: 1, 8>}, {transform_indices = @transform_3, window_bounds = array<i64: 8, 8>}]} {
    %c0 = arith.constant 0 : index
    %c0_0 = arith.constant 0 : index
    %0 = vector.load %arg1[%c0, %c0_0] : memref<8x32xf32, #tpu.memory_space<vmem>>, vector<8x32xf32>
    %c0_1 = arith.constant 0 : index
    %c0_2 = arith.constant 0 : index
    %1 = vector.load %arg2[%c0_1, %c0_2] : memref<32x8xf32, #tpu.memory_space<vmem>>, vector<32x8xf32>
    %cst = arith.constant dense<0.000000e+00> : vector<8x8xf32>
    %2 = tpu.matmul %0, %1, %cst {dimension_numbers = #tpu.dot_dimension_numbers<[1], [0], [0], [1], [0, 0, 1, 1], [], []>} : vector<8x32xf32>, vector<32x8xf32>, vector<8x8xf32> -> vector<8x8xf32>
    %c0_3 = arith.constant 0 : index
    %c0_4 = arith.constant 0 : index
    %3 = vector.load %arg3[%c0_3, %c0_4] : memref<1x8xf32, #tpu.memory_space<vmem>>, vector<1x8xf32>
    %4 = vector.broadcast %3 : vector<1x8xf32> to vector<8x8xf32>
    %5 = arith.addf %2, %4 : vector<8x8xf32>
    %cst_5 = arith.constant dense<0xFF800000> : vector<8xf32>
    %6 = vector.multi_reduction <maximumf>, %5, %cst_5 [1] : vector<8x8xf32> to vector<8xf32>
    %7 = vector.shape_cast %6 : vector<8xf32> to vector<8x1xf32>
    %8 = vector.broadcast %7 : vector<8x1xf32> to vector<8x8xf32>
    %9 = arith.subf %5, %8 : vector<8x8xf32>
    %10 = math.exp %9 : vector<8x8xf32>
    %cst_6 = arith.constant dense<0.000000e+00> : vector<8xf32>
    %11 = vector.multi_reduction <add>, %10, %cst_6 [1] : vector<8x8xf32> to vector<8xf32>
    %12 = vector.shape_cast %11 : vector<8xf32> to vector<8x1xf32>
    %13 = vector.broadcast %12 : vector<8x1xf32> to vector<8x8xf32>
    %14 = arith.divf %10, %13 : vector<8x8xf32>
    %c0_7 = arith.constant 0 : index
    %c0_8 = arith.constant 0 : index
    %15 = vector.load %arg4[%c0_7, %c0_8] : memref<8x8xf32, #tpu.memory_space<vmem>>, vector<8x8xf32>
    tpu.vector_store %arg4[%c0_7, %c0_8], %14 {strides = array<i32>} : memref<8x8xf32, #tpu.memory_space<vmem>>, vector<8x8xf32>,
    return
  }
  func.func @transform_0(%arg0: i32) -> (i32, i32) {
    %c0_i32 = arith.constant 0 : i32
    %c0_i32_0 = arith.constant 0 : i32
    return %arg0, %c0_i32 : i32, i32
  }
  func.func @transform_1(%arg0: i32) -> (i32, i32) {
    %c0_i32 = arith.constant 0 : i32
    %c0_i32_0 = arith.constant 0 : i32
    %c0_i32_1 = arith.constant 0 : i32
    return %c0_i32, %c0_i32_0 : i32, i32
  }
  func.func @transform_2(%arg0: i32) -> (i32, i32) {
    %c0_i32 = arith.constant 0 : i32
    %c0_i32_0 = arith.constant 0 : i32
    %c0_i32_1 = arith.constant 0 : i32
    return %c0_i32, %c0_i32_0 : i32, i32
  }
  func.func @transform_3(%arg0: i32) -> (i32, i32) {
    %c0_i32 = arith.constant 0 : i32
    %c0_i32_0 = arith.constant 0 : i32
    return %arg0, %c0_i32 : i32, i32
  }
}

</mosaic_0001>

<bundles_post_ra>
// kernel: tpu_custom_call.1
= control target key start
LH: loop header
LB: loop body
LE: loop exit
PB: predicated region body
PF: predicated region fallthrough
CT: control target
= control target key end

     0   :  { %8 = vsyncpa [#allocation3], 0  ;;  %v179_v1 = vmov 0.0   ;;  %vm180_vm0 = vmmov 0   ;;  %vm27_vm1 = vcmask 261120   ;;  %vm101_vm2 = vcmask 64512   ;;  %s228_s0 = inlined_call_operand.vmem [shape: f32[2,32], index: 0, kind: input, shape index: {}]   ;;  %s229_s1 = inlined_call_operand.vmem [shape: f32[32,8], index: 1, kind: input, shape index: {}]   ;;  %s230_s2 = inlined_call_operand.vmem [shape: f32[1,8], index: 2, kind: input, shape index: {}]   ;;  %s231_s3 = inlined_call_operand.hbm [shape: f32[2,8], index: 3, kind: output, shape index: {}]  }
   0x1   :  { %v19_v0 = vld [vmem:[%s229_s1 + $0x18] sm:$0xff]  ;;  %137 = vmatprep.subr.mxu0 %v179_v1  ;;  %v18_v2 = vld [vmem:[%s229_s1 + $0x10] sm:$0xff]  ;;  %145 = vmatprep.mubr.msk.f32.mxu0 %vm180_vm0, %v179_v1  ;;  %v17_v3 = vld [vmem:[%s229_s1 + $0x8] sm:$0xff] }
   0x2   :  { %138 = vmatpush3.msra.mxu0 %v19_v0  ;;  %v16_v4 = vld [vmem:[%s229_s1] sm:$0xff] }
   0x3   :  { %139 = vmatprep.subr.mxu0 %v179_v1  ;;  %v15_v5 = vld [vmem:[%s228_s0] sm:$0xff] }
   0x4   :  { %140 = vmatpush3.msra.mxu0 %v18_v2  ;;  %v130_v6 = vld [vmem:[%s230_s2] ss:$0 sm:$0xff] }
   0x5   :  { %141 = vmatprep.subr.mxu0 %v179_v1 }
   0x6   :  { %142 = vmatpush3.msra.mxu0 %v17_v3 }
   0x7   :  { %143 = vmatprep.subr.mxu0 %v179_v1 }
   0x8   :  { %144 = vmatpush3.msra.mxu0 %v16_v4 }
   0x9   :  { %146 = vmatmul.mubr.msk.f32.vlgmr.msra.gmra.mxu0 %vm27_vm1, %v15_v5 }
  0xc9   :  { %v97_v7 = vpop.f32.mrf.mxu0 }
  0xca   :  { %v98_v8 = vadd.f32 %v130_v6, %v97_v7 }
  0xcb   :  { %v147_v9 = vpop.f32.mrf.mxu0 }
  0xcc   :  { %v102_v10 = vsel %vm101_vm2, %v98_v8, -inf }
  0xcd   :  { %103 = vmax.xlane.f32.xlu0 %v102_v10 }
 0x156   :  { %v104_v11 = vpop.xlane.xlu0 %103 }
 0x157   :  { %v105_v12 = vsub.f32 %v98_v8, %v104_v11 }
 0x159   :  { %v106_v13 = vmul.f32 1.442695, %v105_v12 }
 0x15b   :  { %153 = vpow2.f32 %v106_v13 }
 0x168   :  { %v154_v14 = vpop.eup %153 }
 0x169   :  { %v108_v15 = vsel %vm101_vm2, %v154_v14, 0.0 }
 0x16a   :  { %109 = vadd.xlane.f32.xlu0 %v108_v15 }
 0x1f3   :  { %v110_v16 = vpop.xlane.xlu0 %109 }
 0x1f4   :  { %155 = vrcp.f32 %v110_v16 }
 0x201   :  { %v156_v17 = vpop.eup %155 }
 0x202   :  { %v112_v18 = vmul.f32 %v156_v17, %v154_v14 }
 0x204   :  { %113 = vst.msk [vmem:[#allocation2] sm:$0xff] %vm101_vm2, %v112_v18 }
 0x205   :  { %118 = vsyncadd [#allocation3], 96  ;;  %s181_s0 = smov [#allocation2]  }
 0x206   :  { %s119_s1 = sshll.u32 %s181_s0, 4  ;;  %s120_s1 = int_to_ptr.vmem [resolvable:$true] %s119_s1 }
 0x207   :  { %s157_s2 = scalar_lea.vmem %s120_s1, 32  ;;  %s161_s24 = scalar_lea.vmem %s120_s1, 128 }
 0x208   :  { %p158_p0 = scmp.ne.s32.totalorder %s120_s1, %s157_s2  ;;  %p162_p1 = scmp.lt.s32.totalorder %s120_s1, %s120_s1 }
 0x209   :  { %p163_p2 = scmp.lt.s32.totalorder %s161_s24, %s157_s2 }
 0x20b   :  { %p164_p3 = por %p163_p2, %p162_p1 }
 0x20d   :  { %p165_p4 = pnand %p164_p3, %p158_p0 }
 0x20f   :  { %168 = shalt.err (!%p165_p4)
}
 0x210   :  { %s182_s25 = smov 32   ;;  %s183_s26 = smov 2  }
 0x211   :  { %125 = dma.vmem_to_hbm [thread:$0]  %s120_s1, 32, %s231_s3, [#allocation3], %s182_s25, %s182_s25, %s183_s26  }
 0x212   :  { %177 = dma.done.wait [#allocation3], 128  }
 0x213   :  { %178 = vsyncadd [#allocation3], 4294967168 }
 0x214   :  { %129 = vsyncpa [#allocation3], 1 }

// kernel: tpu_custom_call.1
= control target key start
LH: loop header
LB: loop body
LE: loop exit
PB: predicated region body
PF: predicated region fallthrough
CT: control target
= control target key end

     0   :  { %8 = vsyncpa [#allocation3], 0  ;;  %v179_v1 = vmov 0.0   ;;  %vm180_vm0 = vmmov 0   ;;  %vm27_vm1 = vcmask 261120   ;;  %vm101_vm2 = vcmask 64512   ;;  %s228_s0 = inlined_call_operand.vmem [shape: f32[2,32], index: 0, kind: input, shape index: {}]   ;;  %s229_s1 = inlined_call_operand.vmem [shape: f32[32,8], index: 1, kind: input, shape index: {}]   ;;  %s230_s2 = inlined_call_operand.vmem [shape: f32[1,8], index: 2, kind: input, shape index: {}]   ;;  %s231_s3 = inlined_call_operand.hbm [shape: f32[2,8], index: 3, kind: output, shape index: {}]  }
   0x1   :  { %v19_v0 = vld [vmem:[%s229_s1 + $0x18] sm:$0xff]  ;;  %137 = vmatprep.subr.mxu0 %v179_v1  ;;  %v18_v2 = vld [vmem:[%s229_s1 + $0x10] sm:$0xff]  ;;  %145 = vmatprep.mubr.msk.f32.mxu0 %vm180_vm0, %v179_v1  ;;  %v17_v3 = vld [vmem:[%s229_s1 + $0x8] sm:$0xff] }
   0x2   :  { %138 = vmatpush3.msra.mxu0 %v19_v0  ;;  %v16_v4 = vld [vmem:[%s229_s1] sm:$0xff] }
   0x3   :  { %139 = vmatprep.subr.mxu0 %v179_v1  ;;  %v15_v5 = vld [vmem:[%s228_s0] sm:$0xff] }
   0x4   :  { %140 = vmatpush3.msra.mxu0 %v18_v2  ;;  %v130_v6 = vld [vmem:[%s230_s2] ss:$0 sm:$0xff] }
   0x5   :  { %141 = vmatprep.subr.mxu0 %v179_v1 }
   0x6   :  { %142 = vmatpush3.msra.mxu0 %v17_v3 }
   0x7   :  { %143 = vmatprep.subr.mxu0 %v179_v1 }
   0x8   :  { %144 = vmatpush3.msra.mxu0 %v16_v4 }
   0x9   :  { %146 = vmatmul.mubr.msk.f32.vlgmr.msra.gmra.mxu0 %vm27_vm1, %v15_v5 }
  0xc9   :  { %v97_v7 = vpop.f32.mrf.mxu0 }
  0xca   :  { %v98_v8 = vadd.f32 %v130_v6, %v97_v7 }
  0xcb   :  { %v147_v9 = vpop.f32.mrf.mxu0 }
  0xcc   :  { %v102_v10 = vsel %vm101_vm2, %v98_v8, -inf }
  0xcd   :  { %103 = vmax.xlane.f32.xlu0 %v102_v10 }
 0x156   :  { %v104_v11 = vpop.xlane.xlu0 %103 }
 0x157   :  { %v105_v12 = vsub.f32 %v98_v8, %v104_v11 }
 0x159   :  { %v106_v13 = vmul.f32 1.442695, %v105_v12 }
 0x15b   :  { %153 = vpow2.f32 %v106_v13 }
 0x168   :  { %v154_v14 = vpop.eup %153 }
 0x169   :  { %v108_v15 = vsel %vm101_vm2, %v154_v14, 0.0 }
 0x16a   :  { %109 = vadd.xlane.f32.xlu0 %v108_v15 }
 0x1f3   :  { %v110_v16 = vpop.xlane.xlu0 %109 }
 0x1f4   :  { %155 = vrcp.f32 %v110_v16 }
 0x201   :  { %v156_v17 = vpop.eup %155 }
 0x202   :  { %v112_v18 = vmul.f32 %v156_v17, %v154_v14 }
 0x204   :  { %113 = vst.msk [vmem:[#allocation2] sm:$0xff] %vm101_vm2, %v112_v18 }
 0x205   :  { %118 = vsyncadd [#allocation3], 96  ;;  %s181_s0 = smov [#allocation2]  }
 0x206   :  { %s119_s1 = sshll.u32 %s181_s0, 4  ;;  %s120_s1 = int_to_ptr.vmem [resolvable:$true] %s119_s1 }
 0x207   :  { %s157_s2 = scalar_lea.vmem %s120_s1, 32  ;;  %s161_s24 = scalar_lea.vmem %s120_s1, 128 }
 0x208   :  { %p158_p0 = scmp.ne.s32.totalorder %s120_s1, %s157_s2  ;;  %p162_p1 = scmp.lt.s32.totalorder %s120_s1, %s120_s1 }
 0x209   :  { %p163_p2 = scmp.lt.s32.totalorder %s161_s24, %s157_s2 }
 0x20b   :  { %p164_p3 = por %p163_p2, %p162_p1 }
 0x20d   :  { %p165_p4 = pnand %p164_p3, %p158_p0 }
 0x20f   :  { %168 = shalt.err (!%p165_p4)
}
 0x210   :  { %s182_s25 = smov 32   ;;  %s183_s26 = smov 2  }
 0x211   :  { %125 = dma.vmem_to_hbm [thread:$0]  %s120_s1, 32, %s231_s3, [#allocation3], %s182_s25, %s182_s25, %s183_s26  }
 0x212   :  { %177 = dma.done.wait [#allocation3], 128  }
 0x213   :  { %178 = vsyncadd [#allocation3], 4294967168 }
 0x214   :  { %129 = vsyncpa [#allocation3], 1 }

</bundles_post_ra>
